<compile_context>
chip_gen: v7x
topology: tpu7x:2x2x1
jax: 0.10.0
libtpu: 0.0.40
codegen_flags: <defaults>
</compile_context>

<pallas_src>
import jax
import jax.numpy as jnp
from jax.experimental import pallas as pl
from jax.experimental.pallas import tpu as pltpu

C_IN = 64
C_MID = 32
C_OUT = 32
BN_EPS = 1e-5


def _round_up(x, m):
    return ((x + m - 1) // m) * m


def _projection_kernel(x_ref, w1t_ref, w2t_ref, b1_ref, b2_ref, o_ref):
    # x_ref : (1, C_IN, T)       w1t_ref: (C_MID, C_IN)   w2t_ref: (C_OUT, C_MID)
    # b1_ref: (C_MID, 1)         b2_ref : (C_OUT, 1)      o_ref  : (1, C_OUT, T)
    x = x_ref[0]                                              # (C_IN, T)
    # Conv1 (1x1) + folded BN1 + ReLU
    h = jnp.dot(w1t_ref[...], x, preferred_element_type=jnp.float32)
    h = jnp.maximum(h + b1_ref[...], 0.0)                     # (C_MID, T)
    # Conv2 (1x1) + folded BN2
    y = jnp.dot(w2t_ref[...], h.astype(w2t_ref.dtype),
                preferred_element_type=jnp.float32)
    o_ref[0] = (y + b2_ref[...]).astype(o_ref.dtype)          # (C_OUT, T)


def projection_head_4x4_pallas(x_nchw, params, *, tile_hw=2048,
                               act_dtype=None):
    """x_nchw: (N, 64, H, W) -> (N, 32, H, W).

    tile_hw: pixel-axis tile (multiple of 128).  2048 keeps the double-
             buffered VMEM footprint small (<2 MiB) on every chip while
             getting close to HBM roofline.
    act_dtype: optional compute dtype for activations/weights (e.g.
             jnp.bfloat16 on v6e/v7x to halve HBM traffic); f32 accumulation
             is always used inside the kernel.
    """
    n, c, h, w = x_nchw.shape
    assert c == C_IN
    assert tile_hw % 128 == 0
    out_dtype = x_nchw.dtype
    hw = h * w

    # Free reshape: NCHW -> (N, C_IN, H*W) -- channels on sublanes, pixels on
    # lanes.  No transpose, no extra HBM pass.
    x3 = x_nchw.reshape(n, C_IN, hw)

    # Pick a tile that is a multiple of 128 and pad the pixel axis if needed
    # (replaces the old `m % tm == 0` assert).
    t = min(tile_hw, _round_up(hw, 128))
    hw_pad = _round_up(hw, t)
    if hw_pad != hw:
        x3 = jnp.pad(x3, ((0, 0), (0, 0), (0, hw_pad - hw)))

    # Fold eval-mode BN into the conv weights (exact: scale is per output
    # channel) and a per-channel shift.
    s1 = params["g1"] / jnp.sqrt(params["v1"] + BN_EPS)            # (C_MID,)
    b1 = (params["be1"] - params["mu1"] * s1).reshape(C_MID, 1)
    w1t = (params["w1"] * s1[None, :]).T                           # (C_MID, C_IN)
    s2 = params["g2"] / jnp.sqrt(params["v2"] + BN_EPS)            # (C_OUT,)
    b2 = (params["be2"] - params["mu2"] * s2).reshape(C_OUT, 1)
    w2t = (params["w2"] * s2[None, :]).T                           # (C_OUT, C_MID)

    if act_dtype is not None:
        x3 = x3.astype(act_dtype)
        w1t = w1t.astype(act_dtype)
        w2t = w2t.astype(act_dtype)
    b1 = b1.astype(jnp.float32)
    b2 = b2.astype(jnp.float32)

    grid = (n, hw_pad // t)
    full = lambda i, j: (0, 0)

    out_pad = pl.pallas_call(
        _projection_kernel,
        out_shape=jax.ShapeDtypeStruct((n, C_OUT, hw_pad), out_dtype),
        grid_spec=pltpu.PrefetchScalarGridSpec(
            num_scalar_prefetch=0,
            grid=grid,
            in_specs=[
                pl.BlockSpec((1, C_IN, t), lambda i, j: (i, 0, j)),
                pl.BlockSpec((C_MID, C_IN), full),
                pl.BlockSpec((C_OUT, C_MID), full),
                pl.BlockSpec((C_MID, 1), full),
                pl.BlockSpec((C_OUT, 1), full),
            ],
            out_specs=pl.BlockSpec((1, C_OUT, t), lambda i, j: (i, 0, j)),
        ),
        compiler_params=pltpu.CompilerParams(
            dimension_semantics=("parallel", "parallel")),
    )(x3, w1t, w2t, b1, b2)

    if hw_pad != hw:
        out_pad = out_pad[:, :, :hw]
    # Free reshape back: (N, C_OUT, H*W) -> NCHW.
    return out_pad.reshape(n, C_OUT, h, w)


def _reference(x_nchw, params):
    """Pure-JAX reference (same math, NCHW)."""
    x = jnp.transpose(x_nchw, (0, 2, 3, 1))          # NHWC
    h = x @ params["w1"]
    h = (h - params["mu1"]) * params["g1"] / jnp.sqrt(params["v1"] + BN_EPS) \
        + params["be1"]
    h = jnp.maximum(h, 0.0)
    y = h @ params["w2"]
    y = (y - params["mu2"]) * params["g2"] / jnp.sqrt(params["v2"] + BN_EPS) \
        + params["be2"]
    return jnp.transpose(y, (0, 3, 1, 2))


def _init_params(key):
    ks = jax.random.split(key, 8)
    # Conv weights: PyTorch layout is (out, in, 1, 1); stored here as (in, out).
    w1 = jax.random.normal(ks[0], (C_IN, C_MID), jnp.float32) * 0.05
    w2 = jax.random.normal(ks[1], (C_MID, C_OUT), jnp.float32) * 0.05
    return {
        "w1": w1, "w2": w2,
        "g1": 1.0 + 0.1 * jax.random.normal(ks[2], (C_MID,), jnp.float32),
        "be1": 0.1 * jax.random.normal(ks[3], (C_MID,), jnp.float32),
        "mu1": 0.1 * jax.random.normal(ks[4], (C_MID,), jnp.float32),
        "v1": jnp.abs(jax.random.normal(ks[5], (C_MID,), jnp.float32)) + 0.5,
        "g2": 1.0 + 0.1 * jax.random.normal(ks[6], (C_OUT,), jnp.float32),
        "be2": 0.1 * jax.random.normal(ks[7], (C_OUT,), jnp.float32),
        "mu2": jnp.zeros((C_OUT,), jnp.float32),
        "v2": jnp.ones((C_OUT,), jnp.float32),
    }


if __name__ == "__main__":
    key = jax.random.PRNGKey(0)
    kx, kp = jax.random.split(key)
    # Small input consistent with the module: N=2, C=64, H=W=16.
    x = jax.random.normal(kx, (2, C_IN, 16, 16), jnp.float32)
    params = _init_params(kp)

    out = projection_head_4x4_pallas(x, params)
    out = jax.block_until_ready(out)

    ref = jax.block_until_ready(_reference(x, params))
    assert out.shape == (2, C_OUT, 16, 16)
    assert jnp.allclose(out, ref, atol=1e-4, rtol=1e-4)
    print("KERNEL_OK")
</pallas_src>

<mosaic_0001>
module attributes {stable_mosaic.version = 11 : i64} {
  func.func @_projection_kernel(%arg0: i32, %arg1: i32, %arg2: memref<1x64x256xf32, #tpu.memory_space<vmem>>, %arg3: memref<32x64xf32, #tpu.memory_space<vmem>>, %arg4: memref<32x32xf32, #tpu.memory_space<vmem>>, %arg5: memref<32x1xf32, #tpu.memory_space<vmem>>, %arg6: memref<32x1xf32, #tpu.memory_space<vmem>>, %arg7: memref<1x32x256xf32, #tpu.memory_space<vmem>>) attributes {dimension_semantics = [#tpu.dimension_semantics<parallel>, #tpu.dimension_semantics<parallel>], iteration_bounds = array<i64: 2, 1>, scalar_prefetch = 0 : i64, scratch_operands = 0 : i64, tpu.core_type = #tpu.core_type<tc>, window_params = [{transform_indices = @transform_0, window_bounds = array<i64: 1, 64, 256>}, {pipeline_mode = #tpu.pipeline_mode<synchronous>, transform_indices = @transform_1, window_bounds = array<i64: 32, 64>}, {pipeline_mode = #tpu.pipeline_mode<synchronous>, transform_indices = @transform_2, window_bounds = array<i64: 32, 32>}, {pipeline_mode = #tpu.pipeline_mode<synchronous>, transform_indices = @transform_3, window_bounds = array<i64: 32, 1>}, {pipeline_mode = #tpu.pipeline_mode<synchronous>, transform_indices = @transform_4, window_bounds = array<i64: 32, 1>}, {transform_indices = @transform_5, window_bounds = array<i64: 1, 32, 256>}]} {
    %c0 = arith.constant 0 : index
    %c0_0 = arith.constant 0 : index
    %c0_1 = arith.constant 0 : index
    %0 = vector.load %arg2[%c0, %c0_0, %c0_1] : memref<1x64x256xf32, #tpu.memory_space<vmem>>, vector<1x64x256xf32>
    %1 = vector.shape_cast %0 : vector<1x64x256xf32> to vector<64x256xf32>
    %c0_2 = arith.constant 0 : index
    %c0_3 = arith.constant 0 : index
    %2 = vector.load %arg3[%c0_2, %c0_3] : memref<32x64xf32, #tpu.memory_space<vmem>>, vector<32x64xf32>
    %cst = arith.constant dense<0.000000e+00> : vector<32x256xf32>
    %3 = tpu.matmul %2, %1, %cst {dimension_numbers = #tpu.dot_dimension_numbers<[1], [0], [0], [1], [0, 0, 1, 1], [], []>} : vector<32x64xf32>, vector<64x256xf32>, vector<32x256xf32> -> vector<32x256xf32>
    %c0_4 = arith.constant 0 : index
    %c0_5 = arith.constant 0 : index
    %4 = vector.load %arg5[%c0_4, %c0_5] : memref<32x1xf32, #tpu.memory_space<vmem>>, vector<32x1xf32>
    %5 = vector.broadcast %4 : vector<32x1xf32> to vector<32x256xf32>
    %6 = arith.addf %3, %5 : vector<32x256xf32>
    %cst_6 = arith.constant 0.000000e+00 : f32
    %7 = vector.broadcast %cst_6 : f32 to vector<32x256xf32>
    %8 = arith.maximumf %6, %7 : vector<32x256xf32>
    %c0_7 = arith.constant 0 : index
    %c0_8 = arith.constant 0 : index
    %9 = vector.load %arg4[%c0_7, %c0_8] : memref<32x32xf32, #tpu.memory_space<vmem>>, vector<32x32xf32>
    %cst_9 = arith.constant dense<0.000000e+00> : vector<32x256xf32>
    %10 = tpu.matmul %9, %8, %cst_9 {dimension_numbers = #tpu.dot_dimension_numbers<[1], [0], [0], [1], [0, 0, 1, 1], [], []>} : vector<32x32xf32>, vector<32x256xf32>, vector<32x256xf32> -> vector<32x256xf32>
    %c0_10 = arith.constant 0 : index
    %c0_11 = arith.constant 0 : index
    %11 = vector.load %arg6[%c0_10, %c0_11] : memref<32x1xf32, #tpu.memory_space<vmem>>, vector<32x1xf32>
    %12 = vector.broadcast %11 : vector<32x1xf32> to vector<32x256xf32>
    %13 = arith.addf %10, %12 : vector<32x256xf32>
    %c0_12 = arith.constant 0 : index
    %c0_13 = arith.constant 0 : index
    %c0_14 = arith.constant 0 : index
    %14 = vector.load %arg7[%c0_12, %c0_13, %c0_14] : memref<1x32x256xf32, #tpu.memory_space<vmem>>, vector<1x32x256xf32>
    %15 = vector.shape_cast %14 : vector<1x32x256xf32> to vector<32x256xf32>
    %16 = vector.shape_cast %13 : vector<32x256xf32> to vector<1x32x256xf32>
    tpu.vector_store %arg7[%c0_12, %c0_13, %c0_14], %16 {strides = array<i32>} : memref<1x32x256xf32, #tpu.memory_space<vmem>>, vector<1x32x256xf32>,
    return
  }
  func.func @transform_0(%arg0: i32, %arg1: i32) -> (i32, i32, i32) {
    %c0_i32 = arith.constant 0 : i32
    %c0_i32_0 = arith.constant 0 : i32
    return %arg0, %c0_i32, %arg1 : i32, i32, i32
  }
  func.func @transform_1(%arg0: i32, %arg1: i32) -> (i32, i32) {
    %c0_i32 = arith.constant 0 : i32
    %c0_i32_0 = arith.constant 0 : i32
    %c0_i32_1 = arith.constant 0 : i32
    return %c0_i32, %c0_i32_0 : i32, i32
  }
  func.func @transform_2(%arg0: i32, %arg1: i32) -> (i32, i32) {
    %c0_i32 = arith.constant 0 : i32
    %c0_i32_0 = arith.constant 0 : i32
    %c0_i32_1 = arith.constant 0 : i32
    return %c0_i32, %c0_i32_0 : i32, i32
  }
  func.func @transform_3(%arg0: i32, %arg1: i32) -> (i32, i32) {
    %c0_i32 = arith.constant 0 : i32
    %c0_i32_0 = arith.constant 0 : i32
    %c0_i32_1 = arith.constant 0 : i32
    return %c0_i32, %c0_i32_0 : i32, i32
  }
  func.func @transform_4(%arg0: i32, %arg1: i32) -> (i32, i32) {
    %c0_i32 = arith.constant 0 : i32
    %c0_i32_0 = arith.constant 0 : i32
    %c0_i32_1 = arith.constant 0 : i32
    return %c0_i32, %c0_i32_0 : i32, i32
  }
  func.func @transform_5(%arg0: i32, %arg1: i32) -> (i32, i32, i32) {
    %c0_i32 = arith.constant 0 : i32
    %c0_i32_0 = arith.constant 0 : i32
    return %arg0, %c0_i32, %arg1 : i32, i32, i32
  }
}

</mosaic_0001>

<bundles_post_ra>
// kernel: tpu_custom_call.1
= control target key start
LH: loop header
LB: loop body
LE: loop exit
PB: predicated region body
PF: predicated region fallthrough
CT: control target
= control target key end

     0   :  { %10 = vsyncpa [#allocation3], 0  ;;  %s1179_s0 = inlined_call_operand.hbm [shape: f32[2,64,256], index: 0, kind: input, shape index: {}]   ;;  %s1180_s1 = inlined_call_operand.vmem [shape: f32[32,64], index: 1, kind: input, shape index: {}]   ;;  %s1181_s2 = inlined_call_operand.vmem [shape: f32[32,32], index: 2, kind: input, shape index: {}]   ;;  %s1182_s3 = inlined_call_operand.vmem [shape: f32[32,1], index: 3, kind: input, shape index: {}]   ;;  %s1183_s4 = inlined_call_operand.vmem [shape: f32[32,1], index: 4, kind: input, shape index: {}]   ;;  %s1184_s5 = inlined_call_operand.hbm [shape: f32[2,32,256], index: 5, kind: output, shape index: {}]  }
   0x1   :  { %12 = vsyncpa [#allocation3 + $0x1], 0 }
   0x2   :  { %13 = vsyncpa [#allocation4], 0 }
   0x3   :  { %15 = vsyncpa [#allocation4 + $0x1], 0  ;;  %s929_s18 = smov 0   ;;  %s931_s19 = smov 0  }
   0x4   :  { %s933_s20 = smov 0   ;;  %s935_s21 = smov 0  }
   0x5   :  { %s937_s22 = smov 0   ;;  %s939_s23 = smov 0  }
   0x6 LB: > { %s658_s24 = sadd.s32 4294967295, %s889_s23   ;;  %s659_s25 = sadd.s32 4294967294, %s889_s23   ;;  %s889_s23 = sphi %s939_s23, %s21_s23   ;;  %s885_s22 = sphi %s937_s22, %s1199_s22   ;;  %s881_s21 = sphi %s935_s21, %s1198_s21   ;;  %s877_s20 = sphi %s933_s20, %s1197_s20   ;;  %s873_s19 = sphi %s931_s19, %s1196_s19   ;;  %s869_s18 = sphi %s929_s18, %s1195_s18  }
   0x7   : > { %s33_s26 = sadd.s32 1, %s885_s22  ;;  %s42_s27 = sadd.s32 1, %s877_s20 }
   0x8   : > { %p35_p0 = scmp.ge.s32.totalorder %s33_s26, 2  ;;  %p49_p1 = scmp.ne.s32.totalorder %s877_s20, %s873_s19 }
   0x9   : > { %p50_p2 = scmp.eq.s32.totalorder %s889_s23, 0  ;;  %p55_p3 = scmp.ne.s32.totalorder %s873_s19, %s869_s18 }
   0xa   : > { %s1201_s26 = smov (%p35_p0, %s33_s26), 0  ;;  %p56_p5 = scmp.eq.s32.totalorder %s658_s24, 0 }
   0xb   : > { %p970_p4 = por %p50_p2, %p49_p1  ;;  %s37_s29 = ssub.s32 %s885_s22, %s1201_s26 }
   0xc   : > { %p165_p6 = scmp.eq.s32.totalorder %s658_s24, 1  ;;  %p40_p7 = scmp.eq.s32.totalorder %s37_s29, 0 }
   0xd   : > { %p976_p8 = por %p56_p5, %p55_p3  ;;  %p171_p10 = scmp.eq.s32.totalorder %s659_s25, 1 }
   0xe   : > { %p980_p9 = por %p165_p6, %p49_p1  ;;  %p719_p13 = scmp.lt.s32.totalorder %s889_s23, 2 }
   0xf   : > { %s985_s7 = scalar_select %p40_p7, %s877_s20, %s42_s27  }
  0x10   : > { %s1188_s6 = scalar_select %p980_p9, 1, 0 }
  0x11   : > { %p987_p11 = por %p171_p10, %p55_p3  ;;  %s203_s9 = sand.u32 1, %s877_s20  }
  0x12   : > { %s662_s10 = sshll.u32 %s203_s9, 7  ;;  %s681_s11 = sshll.u32 %s885_s22, 11 }
  0x13   : > { %s1189_s8 = scalar_select %p987_p11, 1, 0 }
  0x14   : > { %s998_s14 = scalar_lea.hbm %s1179_s0, %s681_s11  ;;  %s207_s15 = scalar_lea.vmem [#allocation2], %s662_s10 }
  0x15   : > { %s216_s16 = sshll.u32 %s207_s15, 4  ;;  %p1004_p0 = pnand %p719_p13, %p970_p4  ;;  %s1000_s16 = int_to_ptr.vmem [resolvable:$true] %s216_s16 }
  0x16   : > { %s1009_s24 = scalar_lea.sflag [#allocation3], %s203_s9  ;;  %s777_s25 = scalar_lea.hbm %s998_s14, 2048 }
  0x17   : > { %p778_p2 = scmp.ne.s32.totalorder %s998_s14, %s777_s25  ;;  %p779_p3 = pneg %p1004_p0 }
  0x18   : > { %s782_s28 = scalar_lea.hbm %s1179_s0, 4096  ;;  %p783_p4 = scmp.lt.u32.totalorder %s998_s14, %s1179_s0 }
  0x19   : > { %p780_p5 = pnand %p779_p3, %p778_p2  ;;  %p784_p7 = scmp.lt.u32.totalorder %s782_s28, %s777_s25 }
  0x1a   : > { %p786_p13 = scmp.lt.u32.totalorder %s777_s25, %s998_s14 }
  0x1b   : > { %p781_p6 = pneg %p780_p5  ;;  %p785_p10 = por %p784_p7, %p783_p4 }
  0x1d   : > { %p787_p12 = por %p786_p13, %p785_p10 }
  0x1f   : > { %p788_p1 = pnand %p787_p12, %p781_p6 }
  0x21   : > { %791 = shalt.err (!%p788_p1)
}
  0x22   : > { %s792_s9 = scalar_lea.vmem %s1000_s16, 2048  ;;  %s891_s12 = smov [#allocation2]  }
  0x23   : > { %p793_p2 = scmp.ne.s32.totalorder %s1000_s16, %s792_s9  ;;  %s797_s13 = sshll.u32 %s891_s12, 4  ;;  %s798_s13 = int_to_ptr.vmem [resolvable:$false] %s797_s13 }
  0x24   : > { %s799_s15 = scalar_lea.vmem %s798_s13, 4096  ;;  %p800_p9 = scmp.lt.s32.totalorder %s1000_s16, %s798_s13 }
  0x25   : > { %p795_p5 = pnand %p793_p2, %p779_p3  ;;  %p801_p4 = scmp.lt.s32.totalorder %s799_s15, %s792_s9 }
  0x27   : > { %p796_p11 = pneg %p795_p5  ;;  %p802_p7 = por %p801_p4, %p800_p9 }
  0x29   : > { %p803_p10 = pnand %p802_p7, %p796_p11 }
  0x2b   : > { %806 = shalt.err (!%p803_p10)
}
  0x2c   : > { %s892_s25 = smov 256   ;;  %s893_s27 = smov 16  }
  0x2d   : > { %714 = dma.hbm_to_vmem [thread:$0]  (!%p1004_p0), %s998_s14, 2048, %s1000_s16, %s1009_s24, %s892_s25, %s892_s25, %s893_s27  }
  0x2e   : > { %p224_p12 = scmp.lt.s32.totalorder %s889_s23, 3  ;;  %p1191_p1 = scmp.ge.s32.totalorder %s889_s23, 1 }
  0x30   : > { %p225_p3 = pnand %p1191_p1, %p224_p12 }
  0x31   : > { %s1041_s29 = sand.u32 (!%p225_p3), 1, %s873_s19  }
  0x32   : > { %228 = sbr.rel (%p225_p3) target bundleno = 554 (0x22a), region = 40  ;;  %s666_s28 = sshll.u32 (!%p225_p3), %s1041_s29, 7 }
  0x33   : > { %s231_s10 = scalar_lea.sflag (!%p225_p3), [#allocation3], %s1041_s29  ;;  %s1045_s11 = scalar_lea.vmem (!%p225_p3), [#allocation2], %s666_s28 }
  0x39   : > { %860 = dma.done.wait (%p976_p8), %s231_s10, 2048  }
  0x3a   : > { %862 = vsyncadd (%p976_p8), %s231_s10, 4294965248  ;;  %v894_v0 = vmov 0.0   ;;  %v895_v1 = vmov 0   ;;  %v264_v2 = vld [vmem:[%s1045_s11 + $0x8] sm:$0xff]  ;;  %v266_v3 = vld [vmem:[%s1045_s11 + $0x18] sm:$0xff]  ;;  %vm307_vm0 = vcmask 523264  }
  0x3b   : > { %384 = vmatprep.mubr.f32.mxu0 %v894_v0  ;;  %775 = vset.pattern.permute.xlu0 %v895_v1  ;;  %v263_v4 = vld [vmem:[%s1045_s11] sm:$0xff]  ;;  %v683_v5 = vpack.c.bf16 %v266_v3, %v264_v2  ;;  %v265_v6 = vld [vmem:[%s1045_s11 + $0x10] sm:$0xff]  ;;  %v268_v7 = vld [vmem:[%s1045_s11 + $0x28] sm:$0xff]  ;;  %vm445_vm1 = vcmask 261120   ;;  %s667_s24 = sshll.u32 %s1041_s29, 6  ;;  %s682_s13 = sshll.u32 %s881_s21, 10 }
  0x3c   : > { %776 = vset.pattern.permute.xlu1 %v895_v1  ;;  %522 = vmatprep.mubr.f32.mxu1 %v894_v0  ;;  %v270_v8 = vld [vmem:[%s1045_s11 + $0x38] sm:$0xff]  ;;  %v685_v9 = vpack.c.bf16 %v265_v6, %v263_v4  ;;  %v267_v11 = vld [vmem:[%s1045_s11 + $0x20] sm:$0xff]  ;;  %v269_v12 = vld [vmem:[%s1045_s11 + $0x30] sm:$0xff]  ;;  %s260_s9 = scalar_lea.vmem [#allocation5], %s667_s24  ;;  %s1130_s27 = scalar_lea.hbm %s1184_s5, %s682_s13 }
  0x3d   : > { %v687_v10 = vpack.c.bf16 %v270_v8, %v268_v7  ;;  %v272_v13 = vld [vmem:[%s1045_s11 + $0x48] sm:$0xff]  ;;  %684 = vmatprep.subr.bf16.mxu0 %v683_v5  ;;  %v274_v14 = vld [vmem:[%s1045_s11 + $0x58] sm:$0xff]  ;;  %v689_v15 = vpack.c.bf16 %v269_v12, %v267_v11  ;;  %v271_v17 = vld [vmem:[%s1045_s11 + $0x40] sm:$0xff]  ;;  %s571_s12 = sshll.u32 %s260_s9, 4  ;;  %s556_s21 = scalar_lea.sflag [#allocation4], %s1041_s29  ;;  %s1125_s12 = int_to_ptr.vmem [resolvable:$true] %s571_s12 }
  0x3e   : > { %686 = vmatpush1.bf16.msra.mxu0 %v685_v9  ;;  %v691_v16 = vpack.c.bf16 %v274_v14, %v272_v13  ;;  %v273_v18 = vld [vmem:[%s1045_s11 + $0x50] sm:$0xff]  ;;  %v276_v19 = vld [vmem:[%s1045_s11 + $0x68] sm:$0xff]  ;;  %v278_v20 = vld [vmem:[%s1045_s11 + $0x78] sm:$0xff]  ;;  %s807_s28 = scalar_lea.vmem %s1125_s12, 1024  ;;  %p1192_p9 = scmp.ne.s32.totalorder %s1188_s6, 0 }
  0x3f   : > { %688 = vmatprep.subr.bf16.mxu0 %v687_v10  ;;  %v283_v21 = vld [vmem:[%s1182_s3] sm:$0xff]  ;;  %v285_v22 = vld [vmem:[%s1182_s3 + $0x10] sm:$0xff]  ;;  %v693_v23 = vpack.c.bf16 %v273_v18, %v271_v17  ;;  %v284_v24 = vld [vmem:[%s1182_s3 + $0x8] sm:$0xff]  ;;  %v695_v25 = vpack.c.bf16 %v278_v20, %v276_v19  ;;  %p808_p8 = scmp.ne.s32.totalorder %s1125_s12, %s807_s28  ;;  %s896_s10 = smov [#allocation5]  }
  0x40   : > { %289 = vperm.xlu0 %775, %v283_v21   ;;  %299 = vperm.xlu1 %776, %v285_v22   ;;  %v275_v26 = vld [vmem:[%s1045_s11 + $0x60] sm:$0xff]  ;;  %v277_v27 = vld [vmem:[%s1045_s11 + $0x70] sm:$0xff]  ;;  %v286_v28 = vld [vmem:[%s1182_s3 + $0x18] sm:$0xff]  ;;  %s811_s11 = sshll.u32 %s896_s10, 4  ;;  %s812_s11 = int_to_ptr.vmem [resolvable:$false] %s811_s11 }
  0x41   : > { %v697_v29 = vpack.c.bf16 %v277_v27, %v275_v26  ;;  %v421_v30 = vld [vmem:[%s1183_s4] sm:$0xff]  ;;  %v422_v31 = vld [vmem:[%s1183_s4 + $0x8] sm:$0xff]  ;;  %v423_v33 = vld [vmem:[%s1183_s4 + $0x10] sm:$0xff]  ;;  %p809_p11 = pnand %p808_p8, %p1192_p9  ;;  %s813_s30 = scalar_lea.vmem %s812_s11, 2048 }
  0x42   : > { %690 = vmatpush1.bf16.msra.mxu0 %v689_v15  ;;  %v279_v32 = vld [vmem:[%s1180_s1] sm:$0xff]  ;;  %v424_v34 = vld [vmem:[%s1183_s4 + $0x18] sm:$0xff]  ;;  %v280_v35 = vld [vmem:[%s1180_s1 + $0x8] sm:$0xff]  ;;  %p814_p6 = scmp.lt.s32.totalorder %s1125_s12, %s812_s11  ;;  %p815_p13 = scmp.lt.s32.totalorder %s813_s30, %s807_s28 }
  0x43   : > { %692 = vmatprep.subr.bf16.mxu0 %v691_v16  ;;  %v281_v36 = vld [vmem:[%s1180_s1 + $0x10] sm:$0xff]  ;;  %v282_v37 = vld [vmem:[%s1180_s1 + $0x18] sm:$0xff]  ;;  %v417_v7 = vld [vmem:[%s1181_s2] sm:$0xff]  ;;  %p810_p0 = pneg %p809_p11 }
  0x44   : > { %294 = vperm.xlu0 %775, %v284_v24   ;;  %304 = vperm.xlu1 %776, %v286_v28   ;;  %v418_v8 = vld [vmem:[%s1181_s2 + $0x8] sm:$0xff]  ;;  %v419_v9 = vld [vmem:[%s1181_s2 + $0x10] sm:$0xff]  ;;  %v420_v10 = vld [vmem:[%s1181_s2 + $0x18] sm:$0xff]  ;;  %p816_p2 = por %p815_p13, %p814_p6 }
  0x46   : > { %694 = vmatpush1.bf16.msra.mxu0 %v693_v23  ;;  %p817_p5 = pnand %p816_p2, %p810_p0 }
  0x47   : > { %696 = vmatprep.subr.bf16.mxu0 %v695_v25 }
  0x48   : > { %427 = vperm.xlu0 %775, %v421_v30   ;;  %432 = vperm.xlu1 %776, %v422_v31  }
  0x4a   : > { %698 = vmatpush1.bf16.msra.mxu0 %v697_v29 }
  0x4c   : > { %437 = vperm.xlu0 %775, %v423_v33   ;;  %442 = vperm.xlu1 %776, %v424_v34  }
  0x4d   : > { %668 = vmatmul.mubr.msk.f32.vlgmr.msra.gmra.mrb[0].mxu0 %vm307_vm0, %v279_v32 }
  0x4e   : > { %390 = vmatprep.mubr.f32.mxu0 %v894_v0 }
  0x51   : > { %669 = vmatmul.mubr.msk.f32.gmra.mrb[2].mxu0 %vm307_vm0, %v280_v35 }
  0x52   : > { %396 = vmatprep.mubr.f32.mxu0 %v894_v0 }
  0x55   : > { %670 = vmatmul.mubr.msk.f32.gmra.mrb[4].mxu0 %vm307_vm0, %v281_v36 }
  0x56   : > { %402 = vmatprep.mubr.f32.mxu0 %v894_v0 }
  0x59   : > { %671 = vmatmul.mubr.msk.f32.gmra.mrb[6].mxu0 %vm307_vm0, %v282_v37 }
  0xbf   : > { %v290_v38 = vpop.permute.xlu0 %289  ;;  %v300_v47 = vpop.permute.xlu1 %299 }
  0xc3   : > { %v295_v42 = vpop.permute.xlu0 %294  ;;  %v305_v58 = vpop.permute.xlu1 %304 }
  0xc7   : > { %v428_v11 = vpop.permute.xlu0 %427  ;;  %v433_v16 = vpop.permute.xlu1 %432 }
  0xcb   : > { %v438_v20 = vpop.permute.xlu0 %437  ;;  %v443_v25 = vpop.permute.xlu1 %442 }
 0x120   : > { %v386_v39 = vpop.f32.mrb[0].mxu0 }
 0x121   : > { %v388_v40 = vpop.f32.mrb[1].mxu0  ;;  %v387_v41 = vadd.f32 %v386_v39, %v290_v38 }
 0x122   : > { %v389_v43 = vadd.f32 %v388_v40, %v290_v38 }
 0x123   : > { %v409_v49 = vmax.f32 %v387_v41, 0.0 }
 0x124   : > { %v392_v44 = vpop.f32.mrb[2].mxu0  ;;  %v410_v51 = vmax.f32 %v389_v43, 0.0 }
 0x125   : > { %v393_v45 = vadd.f32 %v392_v44, %v295_v42  ;;  %v394_v46 = vpop.f32.mrb[3].mxu0 }
 0x126   : > { %v395_v48 = vadd.f32 %v394_v46, %v295_v42 }
 0x127   : > { %v411_v50 = vmax.f32 %v393_v45, 0.0 }
 0x128   : > { %v412_v52 = vmax.f32 %v395_v48, 0.0  ;;  %v398_v53 = vpop.f32.mrb[4].mxu0 }
 0x129   : > { %v400_v54 = vpop.f32.mrb[5].mxu0  ;;  %v701_v55 = vpack.c.bf16 %v411_v50, %v409_v49  ;;  %v399_v57 = vadd.f32 %v398_v53, %v300_v47 }
 0x12a   : > { %v699_v56 = vpack.c.bf16 %v412_v52, %v410_v51  ;;  %v401_v59 = vadd.f32 %v400_v54, %v300_v47 }
 0x12b   : > { %v413_v1 = vmax.f32 %v399_v57, 0.0 }
 0x12c   : > { %v404_v60 = vpop.f32.mrb[6].mxu0  ;;  %700 = vmatprep.subr.bf16.mxu1 %v699_v56  ;;  %v414_v3 = vmax.f32 %v401_v59, 0.0 }
 0x12d   : > { %v405_v61 = vadd.f32 %v404_v60, %v305_v58  ;;  %v406_v62 = vpop.f32.mrb[7].mxu0  ;;  %702 = vmatpush1.bf16.msra.mxu1 %v701_v55 }
 0x12e   : > { %v407_v63 = vadd.f32 %v406_v62, %v305_v58 }
 0x12f   : > { %v415_v2 = vmax.f32 %v405_v61, 0.0 }
 0x130   : > { %v416_v4 = vmax.f32 %v407_v63, 0.0 }
 0x131   : > { %v705_v5 = vpack.c.bf16 %v415_v2, %v413_v1 }
 0x132   : > { %v703_v6 = vpack.c.bf16 %v416_v4, %v414_v3 }
 0x134   : > { %704 = vmatprep.subr.bf16.mxu1 %v703_v6 }
 0x135   : > { %706 = vmatpush1.bf16.msra.mxu1 %v705_v5 }
 0x138   : > { %672 = vmatmul.mubr.msk.f32.vlgmr.msra.gmra.mrb[0].mxu1 %vm445_vm1, %v417_v7 }
 0x139   : > { %528 = vmatprep.mubr.f32.mxu1 %v894_v0 }
 0x13c   : > { %673 = vmatmul.mubr.msk.f32.gmra.mrb[2].mxu1 %vm445_vm1, %v418_v8 }
 0x13d   : > { %534 = vmatprep.mubr.f32.mxu1 %v894_v0 }
 0x140   : > { %674 = vmatmul.mubr.msk.f32.gmra.mrb[4].mxu1 %vm445_vm1, %v419_v9 }
 0x141   : > { %540 = vmatprep.mubr.f32.mxu1 %v894_v0 }
 0x144   : > { %675 = vmatmul.mubr.msk.f32.gmra.mrb[6].mxu1 %vm445_vm1, %v420_v10 }
 0x20b   : > { %v524_v12 = vpop.f32.mrb[0].mxu1 }
 0x20c   : > { %v525_v13 = vadd.f32 %v524_v12, %v428_v11  ;;  %v526_v14 = vpop.f32.mrb[1].mxu1 }
 0x20d   : > { %v527_v15 = vadd.f32 %v526_v14, %v428_v11 }
 0x20e   : > { %547 = vst [vmem:[%s260_s9] sm:$0xff] %v525_v13 }
 0x20f   : > { %548 = vst [vmem:[%s260_s9 + $0x8] sm:$0xff] %v527_v15  ;;  %v530_v17 = vpop.f32.mrb[2].mxu1 }
 0x210   : > { %v531_v18 = vadd.f32 %v530_v17, %v433_v16  ;;  %v532_v19 = vpop.f32.mrb[3].mxu1 }
 0x211   : > { %v533_v0 = vadd.f32 %v532_v19, %v433_v16 }
 0x212   : > { %549 = vst [vmem:[%s260_s9 + $0x10] sm:$0xff] %v531_v18 }
 0x213   : > { %550 = vst [vmem:[%s260_s9 + $0x18] sm:$0xff] %v533_v0  ;;  %v536_v21 = vpop.f32.mrb[4].mxu1 }
 0x214   : > { %v537_v22 = vadd.f32 %v536_v21, %v438_v20  ;;  %v538_v23 = vpop.f32.mrb[5].mxu1 }
 0x215   : > { %v539_v24 = vadd.f32 %v538_v23, %v438_v20 }
 0x216   : > { %551 = vst [vmem:[%s260_s9 + $0x20] sm:$0xff] %v537_v22 }
 0x217   : > { %552 = vst [vmem:[%s260_s9 + $0x28] sm:$0xff] %v539_v24  ;;  %v542_v26 = vpop.f32.mrb[6].mxu1 }
 0x218   : > { %v543_v27 = vadd.f32 %v542_v26, %v443_v25  ;;  %v544_v28 = vpop.f32.mrb[7].mxu1 }
 0x219   : > { %v545_v29 = vadd.f32 %v544_v28, %v443_v25 }
 0x21a   : > { %553 = vst [vmem:[%s260_s9 + $0x30] sm:$0xff] %v543_v27 }
 0x21b   : > { %554 = vst [vmem:[%s260_s9 + $0x38] sm:$0xff] %v545_v29 }
 0x21c   : > { %820 = shalt.err (!%p817_p5)
}
 0x21d   : > { %s821_s14 = scalar_lea.hbm %s1130_s27, 1024  ;;  %s825_s24 = scalar_lea.hbm %s1184_s5, 2048 }
 0x21e   : > { %p822_p4 = scmp.ne.s32.totalorder %s1130_s27, %s821_s14  ;;  %p826_p12 = scmp.lt.u32.totalorder %s1130_s27, %s1184_s5 }
 0x21f   : > { %p827_p1 = scmp.lt.u32.totalorder %s825_s24, %s821_s14  ;;  %p829_p8 = scmp.lt.u32.totalorder %s821_s14, %s1130_s27 }
 0x220   : > { %p823_p7 = pnand %p822_p4, %p1192_p9 }
 0x221   : > { %p828_p3 = por %p827_p1, %p826_p12 }
 0x222   : > { %p824_p10 = pneg %p823_p7 }
 0x223   : > { %p830_p11 = por %p829_p8, %p828_p3 }
 0x225   : > { %p831_p0 = pnand %p830_p11, %p824_p10 }
 0x227   : > { %834 = shalt.err (!%p831_p0)
}
 0x228   : > { %s897_s15 = smov 256   ;;  %s898_s25 = smov 16  }
 0x229   : > { %709 = dma.vmem_to_hbm [thread:$0]  (%p1192_p9), %s1125_s12, 1024, %s1130_s27, %s556_s21, %s897_s15, %s897_s15, %s898_s25  }
 0x22a PF: > { %s586_s28 = sand.u32 1, %s869_s18   ;;  %p1193_p6 = scmp.ne.s32.totalorder %s1189_s8, 0 }
 0x22b   : > { %p1194_p13 = scmp.ge.s32.totalorder %s889_s23, 2  ;;  %s587_s10 = scalar_lea.sflag [#allocation4], %s586_s28 }
 0x22d   : > { %p716_p2 = pnand %p1194_p13, %p1193_p6 }
 0x22f   : > { %864 = dma.done.wait (!%p716_p2), %s587_s10, 1024  }
 0x230   : > { %866 = vsyncadd (!%p716_p2), %s587_s10, 4294966272  ;;  %s21_s23 = sadd.s32 1, %s889_s23   ;;  %s1195_s18 = smov %s873_s19 }
 0x231   : > { %p18_p5 = scmp.ge.s32.totalorder %s21_s23, 4   ;;  %s1196_s19 = smov %s877_s20 }
 0x232   : > { %s1197_s20 = smov %s985_s7  ;;  %s1198_s21 = smov %s885_s22 }
 0x233   : > { %s1199_s22 = smov %s1201_s26  ;;  %20 = sbr.rel (!%p18_p5) target bundleno = 6 (0x6), region = 85 }
 0x23a   :  { %592 = vsyncpa [#allocation3], 1 }
 0x23b   :  { %594 = vsyncpa [#allocation3 + $0x1], 1 }
 0x23c   :  { %595 = vsyncpa [#allocation4], 1 }
 0x23d   :  { %597 = vsyncpa [#allocation4 + $0x1], 1 }

</bundles_post_ra>
